<compile_context>
chip_gen: v5e
topology: v5e:2x2
jax: 0.10.0
libtpu: 0.0.40
codegen_flags: <defaults>
</compile_context>

<pallas_src>
import functools

import jax
import jax.numpy as jnp
from jax.experimental import pallas as pl
from jax.experimental.pallas import tpu as pltpu


def _round_up(x, m):
    return (x + m - 1) // m * m


def _pad2d(a, rows, cols):
    r, c = a.shape
    if r == rows and c == cols:
        return a
    return jnp.pad(a, ((0, rows - r), (0, cols - c)))


def _pad_row(v, cols):
    """Bias vector -> f32 [1, cols] (pad only if needed)."""
    v = v.astype(jnp.float32)
    if v.shape[0] != cols:
        v = jnp.pad(v, (0, cols - v.shape[0]))
    return v.reshape(1, cols)


@functools.lru_cache(maxsize=1)
def _vmem_budget_bytes():
    """~80% of per-core VMEM (v7x: ~51 MiB, v5e/v6e: ~102 MiB)."""
    cap = 64 * 1024 * 1024  # conservative fallback = v7x per-TC physical VMEM
    try:
        info = pltpu.get_tpu_info()
        cap = int(getattr(info, "vmem_capacity_bytes", cap))
    except Exception:
        pass
    return max(int(cap * 0.8), 32 * 1024 * 1024)


def _ffn_kernel_resident(x_ref, w1_ref, b1_ref, w2_ref, b2_ref, o_ref, *,
                         approx_gelu):
    """Weights fully VMEM-resident: one fused pass per row tile."""
    # fc1 on the MXU, f32 accumulation.
    h = jnp.dot(x_ref[...], w1_ref[...], preferred_element_type=jnp.float32)
    # activation_fn == nn.GELU; tanh form goes to the EUP slot.
    h = jax.nn.gelu(h + b1_ref[...], approximate=approx_gelu)
    # activation_dropout: identity (eval mode)
    out = jnp.dot(h.astype(w2_ref.dtype), w2_ref[...],
                  preferred_element_type=jnp.float32) + b2_ref[...]
    # dropout: identity (eval mode)
    o_ref[...] = out.astype(o_ref.dtype)


def _ffn_kernel_streaming(x_ref, w1_ref, b1_ref, w2_ref, b2_ref, o_ref,
                          acc_ref, *, approx_gelu):
    """F-slab streaming with f32 VMEM accumulator (weights too big for VMEM)."""
    f = pl.program_id(1)

    @pl.when(f == 0)
    def _():
        acc_ref[...] = jnp.zeros_like(acc_ref)

    h = jnp.dot(x_ref[...], w1_ref[...], preferred_element_type=jnp.float32)
    h = jax.nn.gelu(h + b1_ref[...], approximate=approx_gelu)
    acc_ref[...] += jnp.dot(h.astype(w2_ref.dtype), w2_ref[...],
                            preferred_element_type=jnp.float32)

    @pl.when(f == pl.num_programs(1) - 1)
    def _():
        o_ref[...] = (acc_ref[...] + b2_ref[...]).astype(o_ref.dtype)


@functools.partial(
    jax.jit,
    static_argnames=("tile_m", "tile_f", "compute_dtype", "approx_gelu"))
def feedforward(x, w1, b1, w2, b2, *, tile_m=512, tile_f=2048,
                compute_dtype=jnp.bfloat16, approx_gelu=True):
    """x: [seq, batch, E];  w1: [E, F], b1: [F];  w2: [F, O], b2: [O]."""
    S, B, E = x.shape
    F = w1.shape[1]
    O = w2.shape[1]
    N = S * B
    out_dtype = x.dtype
    out_isz = jnp.dtype(out_dtype).itemsize
    cd_isz = jnp.dtype(compute_dtype).itemsize

    # Row tiles aligned to the sublane packing of the compute dtype (bf16: 16).
    row_align = 16 if cd_isz == 2 else 8
    tm = min(_round_up(tile_m, row_align), _round_up(N, row_align))
    n_pad = _round_up(N, tm)
    n_tiles = n_pad // tm
    e_pad = _round_up(E, 128)
    f_full = _round_up(F, 128)
    o_pad = _round_up(O, 128)

    budget = _vmem_budget_bytes()

    def resident_vmem(tm_):
        return (2 * tm_ * e_pad * cd_isz                         # x tile (dbl buf)
                + 2 * (e_pad * f_full + f_full * o_pad) * cd_isz  # W1+W2 (safety x2)
                + tm_ * f_full * (4 + cd_isz)                     # fc1 activations
                + 2 * tm_ * o_pad * out_isz                       # out tile (dbl buf)
                + 2 * (f_full + o_pad) * 4)                       # biases

    def streaming_vmem(tm_, f_blk_):
        return (2 * tm_ * e_pad * cd_isz
                + 2 * (e_pad * f_blk_ + f_blk_ * o_pad) * cd_isz  # dbl-buf slabs
                + tm_ * f_blk_ * (4 + cd_isz)
                + tm_ * o_pad * 4                                 # f32 accumulator
                + 2 * tm_ * o_pad * out_isz
                + 2 * (f_blk_ + o_pad) * 4)

    use_resident = resident_vmem(tm) <= budget

    if use_resident:
        f_blk = f_full
        f_pad = f_full
    else:
        f_blk = min(_round_up(tile_f, 128), f_full)
        while f_blk > 128 and streaming_vmem(tm, f_blk) > budget:
            f_blk = _round_up(max(f_blk // 2, 128), 128)
        f_pad = _round_up(F, f_blk)

    # Zero padding is exact for this FFN: padded E columns hit zero weight
    # rows; padded F columns give gelu(0)=0 times zero W2 rows; padded rows and
    # padded O columns are sliced off at the end.  Pads/casts are skipped when
    # not needed so aligned shapes cost no extra HBM passes.
    def to_cd(a):
        return a if a.dtype == compute_dtype else a.astype(compute_dtype)

    x2d = _pad2d(to_cd(x.reshape(N, E)), n_pad, e_pad)
    w1p = _pad2d(to_cd(w1), e_pad, f_pad)
    b1p = _pad_row(b1, f_pad)
    w2p = _pad2d(to_cd(w2), f_pad, o_pad)
    b2p = _pad_row(b2, o_pad)

    weight_bytes = (w1p.size * w1p.dtype.itemsize
                    + w2p.size * w2p.dtype.itemsize)
    weight_passes = 1 if (use_resident or f_pad // f_blk == 1) else n_tiles
    cost = pl.CostEstimate(
        flops=2 * n_pad * e_pad * f_pad + 2 * n_pad * f_pad * o_pad,
        transcendentals=n_pad * f_pad,
        bytes_accessed=(x2d.size * x2d.dtype.itemsize
                        + weight_bytes * weight_passes
                        + b1p.size * 4 + b2p.size * 4
                        + n_pad * o_pad * out_isz),
    )

    if use_resident:
        out2d = pl.pallas_call(
            functools.partial(_ffn_kernel_resident, approx_gelu=approx_gelu),
            out_shape=jax.ShapeDtypeStruct((n_pad, o_pad), out_dtype),
            grid_spec=pltpu.PrefetchScalarGridSpec(
                num_scalar_prefetch=0,
                grid=(n_tiles,),
                in_specs=[
                    pl.BlockSpec((tm, e_pad), lambda i: (i, 0)),    # x rows
                    pl.BlockSpec((e_pad, f_pad), lambda i: (0, 0)),  # W1 resident
                    pl.BlockSpec((1, f_pad), lambda i: (0, 0)),      # b1 resident
                    pl.BlockSpec((f_pad, o_pad), lambda i: (0, 0)),  # W2 resident
                    pl.BlockSpec((1, o_pad), lambda i: (0, 0)),      # b2 resident
                ],
                out_specs=pl.BlockSpec((tm, o_pad), lambda i: (i, 0)),
            ),
            compiler_params=pltpu.CompilerParams(
                dimension_semantics=("parallel",),
                vmem_limit_bytes=budget,
            ),
            cost_estimate=cost,
        )(x2d, w1p, b1p, w2p, b2p)
    else:
        out2d = pl.pallas_call(
            functools.partial(_ffn_kernel_streaming, approx_gelu=approx_gelu),
            out_shape=jax.ShapeDtypeStruct((n_pad, o_pad), out_dtype),
            grid_spec=pltpu.PrefetchScalarGridSpec(
                num_scalar_prefetch=0,
                grid=(n_tiles, f_pad // f_blk),
                in_specs=[
                    pl.BlockSpec((tm, e_pad), lambda i, f: (i, 0)),     # x rows
                    pl.BlockSpec((e_pad, f_blk), lambda i, f: (0, f)),  # W1 slab
                    pl.BlockSpec((1, f_blk), lambda i, f: (0, f)),      # b1 slab
                    pl.BlockSpec((f_blk, o_pad), lambda i, f: (f, 0)),  # W2 slab
                    pl.BlockSpec((1, o_pad), lambda i, f: (0, 0)),      # b2
                ],
                out_specs=pl.BlockSpec((tm, o_pad), lambda i, f: (i, 0)),
                scratch_shapes=[pltpu.VMEM((tm, o_pad), jnp.float32)],
            ),
            compiler_params=pltpu.CompilerParams(
                dimension_semantics=("parallel", "arbitrary"),
                vmem_limit_bytes=budget,
            ),
            cost_estimate=cost,
        )(x2d, w1p, b1p, w2p, b2p)

    return out2d[:N, :O].reshape(S, B, O)


def init_params(key, embedding_dim, ffn_embedding_dim, output_dim):
    """Deterministic synthetic params (uniform, roughly matching nn.Linear scale)."""
    k1, k2, k3, k4 = jax.random.split(key, 4)
    lim1 = 1.0 / (embedding_dim ** 0.5)
    lim2 = 1.0 / (ffn_embedding_dim ** 0.5)
    w1 = jax.random.uniform(k1, (embedding_dim, ffn_embedding_dim),
                            jnp.float32, -lim1, lim1)
    b1 = jax.random.uniform(k2, (ffn_embedding_dim,), jnp.float32, -lim1, lim1)
    w2 = jax.random.uniform(k3, (ffn_embedding_dim, output_dim),
                            jnp.float32, -lim2, lim2)
    b2 = jax.random.uniform(k4, (output_dim,), jnp.float32, -lim2, lim2)
    return w1, b1, w2, b2


if __name__ == "__main__":
    # Small, module-consistent shapes: seq=8, batch=2, embed=32, ffn=64,
    # output_dim=None -> output dim == embedding_dim.
    seq, batch = 8, 2
    embedding_dim, ffn_embedding_dim = 32, 64
    output_dim = embedding_dim

    key = jax.random.PRNGKey(0)
    kx, kp = jax.random.split(key)
    x = jax.random.normal(kx, (seq, batch, embedding_dim), dtype=jnp.float32)
    w1, b1, w2, b2 = init_params(kp, embedding_dim, ffn_embedding_dim,
                                 output_dim)

    out = feedforward(x, w1, b1, w2, b2)
    out = jax.block_until_ready(out)

    # Pure-JAX reference with the module's exact (erf) GELU and matching bf16
    # input/weight quantization; tolerance covers the tanh-GELU approximation
    # (~1e-3) plus bf16 rounding.
    q = lambda a: a.astype(jnp.bfloat16).astype(jnp.float32)
    h = jax.nn.gelu(q(x).reshape(-1, embedding_dim) @ q(w1) + b1,
                    approximate=False)
    ref = (q(h) @ q(w2) + b2).reshape(seq, batch, output_dim)

    assert out.shape == (seq, batch, output_dim)
    err = float(jnp.max(jnp.abs(out - ref)))
    assert err < 3e-2, err

    print("KERNEL_OK")
</pallas_src>

<mosaic_0001>
module attributes {stable_mosaic.version = 11 : i64} {
  func.func @_ffn_kernel_resident(%arg0: i32, %arg1: memref<16x128xbf16, #tpu.memory_space<vmem>>, %arg2: memref<128x128xbf16, #tpu.memory_space<vmem>>, %arg3: memref<1x128xf32, #tpu.memory_space<vmem>>, %arg4: memref<128x128xbf16, #tpu.memory_space<vmem>>, %arg5: memref<1x128xf32, #tpu.memory_space<vmem>>, %arg6: memref<16x128xf32, #tpu.memory_space<vmem>>) attributes {dimension_semantics = [#tpu.dimension_semantics<parallel>], iteration_bounds = array<i64: 1>, scalar_prefetch = 0 : i64, scratch_operands = 0 : i64, tpu.core_type = #tpu.core_type<tc>, window_params = [{transform_indices = @transform_0, window_bounds = array<i64: 16, 128>}, {pipeline_mode = #tpu.pipeline_mode<synchronous>, transform_indices = @transform_1, window_bounds = array<i64: 128, 128>}, {pipeline_mode = #tpu.pipeline_mode<synchronous>, transform_indices = @transform_2, window_bounds = array<i64: 1, 128>}, {pipeline_mode = #tpu.pipeline_mode<synchronous>, transform_indices = @transform_3, window_bounds = array<i64: 128, 128>}, {pipeline_mode = #tpu.pipeline_mode<synchronous>, transform_indices = @transform_4, window_bounds = array<i64: 1, 128>}, {transform_indices = @transform_5, window_bounds = array<i64: 16, 128>}]} {
    %c0 = arith.constant 0 : index
    %c0_0 = arith.constant 0 : index
    %0 = vector.load %arg1[%c0, %c0_0] : memref<16x128xbf16, #tpu.memory_space<vmem>>, vector<16x128xbf16>
    %c0_1 = arith.constant 0 : index
    %c0_2 = arith.constant 0 : index
    %1 = vector.load %arg2[%c0_1, %c0_2] : memref<128x128xbf16, #tpu.memory_space<vmem>>, vector<128x128xbf16>
    %cst = arith.constant dense<0.000000e+00> : vector<16x128xf32>
    %2 = tpu.matmul %0, %1, %cst {dimension_numbers = #tpu.dot_dimension_numbers<[1], [0], [0], [1], [0, 0, 1, 1], [], []>} : vector<16x128xbf16>, vector<128x128xbf16>, vector<16x128xf32> -> vector<16x128xf32>
    %c0_3 = arith.constant 0 : index
    %c0_4 = arith.constant 0 : index
    %3 = vector.load %arg3[%c0_3, %c0_4] : memref<1x128xf32, #tpu.memory_space<vmem>>, vector<1x128xf32>
    %4 = vector.broadcast %3 : vector<1x128xf32> to vector<16x128xf32>
    %5 = arith.addf %2, %4 : vector<16x128xf32>
    %6 = arith.mulf %5, %5 : vector<16x128xf32>
    %7 = arith.mulf %5, %6 : vector<16x128xf32>
    %cst_5 = arith.constant 4.471500e-02 : f32
    %8 = vector.broadcast %cst_5 : f32 to vector<16x128xf32>
    %9 = arith.mulf %8, %7 : vector<16x128xf32>
    %10 = arith.addf %5, %9 : vector<16x128xf32>
    %cst_6 = arith.constant 0.797884583 : f32
    %11 = vector.broadcast %cst_6 : f32 to vector<16x128xf32>
    %12 = arith.mulf %11, %10 : vector<16x128xf32>
    %13 = math.tanh %12 : vector<16x128xf32>
    %cst_7 = arith.constant 1.000000e+00 : f32
    %14 = vector.broadcast %cst_7 : f32 to vector<16x128xf32>
    %15 = arith.addf %14, %13 : vector<16x128xf32>
    %cst_8 = arith.constant 5.000000e-01 : f32
    %16 = vector.broadcast %cst_8 : f32 to vector<16x128xf32>
    %17 = arith.mulf %16, %15 : vector<16x128xf32>
    %18 = arith.mulf %5, %17 : vector<16x128xf32>
    %19 = arith.truncf %18 : vector<16x128xf32> to vector<16x128xbf16>
    %c0_9 = arith.constant 0 : index
    %c0_10 = arith.constant 0 : index
    %20 = vector.load %arg4[%c0_9, %c0_10] : memref<128x128xbf16, #tpu.memory_space<vmem>>, vector<128x128xbf16>
    %cst_11 = arith.constant dense<0.000000e+00> : vector<16x128xf32>
    %21 = tpu.matmul %19, %20, %cst_11 {dimension_numbers = #tpu.dot_dimension_numbers<[1], [0], [0], [1], [0, 0, 1, 1], [], []>} : vector<16x128xbf16>, vector<128x128xbf16>, vector<16x128xf32> -> vector<16x128xf32>
    %c0_12 = arith.constant 0 : index
    %c0_13 = arith.constant 0 : index
    %22 = vector.load %arg5[%c0_12, %c0_13] : memref<1x128xf32, #tpu.memory_space<vmem>>, vector<1x128xf32>
    %23 = vector.broadcast %22 : vector<1x128xf32> to vector<16x128xf32>
    %24 = arith.addf %21, %23 : vector<16x128xf32>
    %c0_14 = arith.constant 0 : index
    %c0_15 = arith.constant 0 : index
    %25 = vector.load %arg6[%c0_14, %c0_15] : memref<16x128xf32, #tpu.memory_space<vmem>>, vector<16x128xf32>
    tpu.vector_store %arg6[%c0_14, %c0_15], %24 {strides = array<i32>} : memref<16x128xf32, #tpu.memory_space<vmem>>, vector<16x128xf32>,
    return
  }
  func.func @transform_0(%arg0: i32) -> (i32, i32) {
    %c0_i32 = arith.constant 0 : i32
    %c0_i32_0 = arith.constant 0 : i32
    return %arg0, %c0_i32 : i32, i32
  }
  func.func @transform_1(%arg0: i32) -> (i32, i32) {
    %c0_i32 = arith.constant 0 : i32
    %c0_i32_0 = arith.constant 0 : i32
    %c0_i32_1 = arith.constant 0 : i32
    return %c0_i32, %c0_i32_0 : i32, i32
  }
  func.func @transform_2(%arg0: i32) -> (i32, i32) {
    %c0_i32 = arith.constant 0 : i32
    %c0_i32_0 = arith.constant 0 : i32
    %c0_i32_1 = arith.constant 0 : i32
    return %c0_i32, %c0_i32_0 : i32, i32
  }
  func.func @transform_3(%arg0: i32) -> (i32, i32) {
    %c0_i32 = arith.constant 0 : i32
    %c0_i32_0 = arith.constant 0 : i32
    %c0_i32_1 = arith.constant 0 : i32
    return %c0_i32, %c0_i32_0 : i32, i32
  }
  func.func @transform_4(%arg0: i32) -> (i32, i32) {
    %c0_i32 = arith.constant 0 : i32
    %c0_i32_0 = arith.constant 0 : i32
    %c0_i32_1 = arith.constant 0 : i32
    return %c0_i32, %c0_i32_0 : i32, i32
  }
  func.func @transform_5(%arg0: i32) -> (i32, i32) {
    %c0_i32 = arith.constant 0 : i32
    %c0_i32_0 = arith.constant 0 : i32
    return %arg0, %c0_i32 : i32, i32
  }
}

</mosaic_0001>

<bundles_post_ra>
// kernel: feedforward.1
= control target key start
LH: loop header
LB: loop body
LE: loop exit
PB: predicated region body
PF: predicated region fallthrough
CT: control target
= control target key end

     0   :  { %s445_s0 = inlined_call_operand.vmem [shape: bf16[16,128], index: 0, kind: input, shape index: {}]   ;;  %s446_s1 = inlined_call_operand.vmem [shape: bf16[128,128], index: 1, kind: input, shape index: {}]   ;;  %s447_s2 = inlined_call_operand.vmem [shape: f32[1,128], index: 2, kind: input, shape index: {}]   ;;  %s448_s3 = inlined_call_operand.vmem [shape: bf16[128,128], index: 3, kind: input, shape index: {}]   ;;  %s449_s4 = inlined_call_operand.vmem [shape: f32[1,128], index: 4, kind: input, shape index: {}]   ;;  %s450_s5 = inlined_call_operand.hbm [shape: f32[16,128], index: 5, kind: output, shape index: {}]  }
   0x1   :  { %v308_v0 = vld [vmem:[%s446_s1 + $0x38] sm:$0xff]  ;;  %v307_v1 = vld [vmem:[%s446_s1 + $0x30] sm:$0xff] }
   0x2   :  { %97 = vmatpush.bf16.msra.mxu0 %v308_v0 }
   0x3   :  { %10 = vsyncpa [#allocation3], 0  ;;  %v306_v2 = vld [vmem:[%s446_s1 + $0x28] sm:$0xff]  ;;  %v305_v3 = vld [vmem:[%s446_s1 + $0x20] sm:$0xff]  ;;  %s352_s27 = smov [#allocation2]   ;;  %s220_s6 = sshll.u32 %s450_s5, 4  ;;  %s221_s6 = int_to_ptr.hbm [resolvable:$true] %s220_s6 }
   0x4   :  { %v304_v4 = vld [vmem:[%s446_s1 + $0x18] sm:$0xff]  ;;  %v303_v5 = vld [vmem:[%s446_s1 + $0x10] sm:$0xff]  ;;  %v302_v6 = vld [vmem:[%s446_s1 + $0x8] sm:$0xff]  ;;  %s218_s28 = sshll.u32 %s352_s27, 4  ;;  %s353_s7 = smov 128   ;;  %s219_s28 = int_to_ptr.vmem [resolvable:$true] %s218_s28 }
   0x5   :  { %v301_v7 = vld [vmem:[%s446_s1] sm:$0xff]  ;;  %v316_v9 = vld [vmem:[%s448_s3 + $0x38] sm:$0xff]  ;;  %v315_v10 = vld [vmem:[%s448_s3 + $0x30] sm:$0xff]  ;;  %s354_s8 = smov 8  }
   0x6   :  { %98 = vmatpush.bf16.msra.mxu0 %v307_v1  ;;  %v300_v8 = vld [vmem:[%s445_s0] sm:$0xff]  ;;  %198 = vmatpush.bf16.msra.mxu1 %v316_v9  ;;  %v314_v11 = vld [vmem:[%s448_s3 + $0x28] sm:$0xff]  ;;  %v312_v13 = vld [vmem:[%s448_s3 + $0x18] sm:$0xff] }
   0x7   :  { %v313_v12 = vld [vmem:[%s448_s3 + $0x20] sm:$0xff]  ;;  %v311_v14 = vld [vmem:[%s448_s3 + $0x10] sm:$0xff]  ;;  %v310_v15 = vld [vmem:[%s448_s3 + $0x8] sm:$0xff] }
   0x8   :  { %v320_v16 = vld [vmem:[%s447_s2] ss:$0 sm:$0xff] }
   0x9   :  { %v309_v17 = vld [vmem:[%s448_s3] sm:$0xff] }
   0xa   :  { %99 = vmatpush.bf16.msra.mxu0 %v306_v2  ;;  %199 = vmatpush.bf16.msra.mxu1 %v315_v10  ;;  %v321_v41 = vld [vmem:[%s449_s4] ss:$0 sm:$0xff] }
   0xe   :  { %100 = vmatpush.bf16.msra.mxu0 %v305_v3  ;;  %200 = vmatpush.bf16.msra.mxu1 %v314_v11 }
  0x12   :  { %101 = vmatpush.bf16.msra.mxu0 %v304_v4  ;;  %201 = vmatpush.bf16.msra.mxu1 %v313_v12 }
  0x16   :  { %102 = vmatpush.bf16.msra.mxu0 %v303_v5  ;;  %202 = vmatpush.bf16.msra.mxu1 %v312_v13 }
  0x1a   :  { %103 = vmatpush.bf16.msra.mxu0 %v302_v6  ;;  %203 = vmatpush.bf16.msra.mxu1 %v311_v14 }
  0x1e   :  { %104 = vmatpush.bf16.msra.mxu0 %v301_v7  ;;  %204 = vmatpush.bf16.msra.mxu1 %v310_v15 }
  0x21   :  { %105 = vmatmul.bf16.vlgmr.msra.gmra.mxu0 %v300_v8 }
  0x22   :  { %205 = vmatpush.bf16.msra.mxu1 %v309_v17 }
  0x9e   :  { %v106_v18 = vpop.f32.mrf.mxu0 }
  0x9f   :  { %v107_v19 = vadd.f32 %v320_v16, %v106_v18 }
  0xa1   :  { %v111_v20 = vmul.f32 %v107_v19, %v107_v19 }
  0xa3   :  { %v113_v21 = vmul.f32 %v111_v20, %v107_v19 }
  0xa5   :  { %v115_v22 = vmul.f32 0.044715, %v113_v21 }
  0xa6   :  { %v108_v23 = vpop.f32.mrf.mxu0 }
  0xa7   :  { %v117_v24 = vadd.f32 %v115_v22, %v107_v19  ;;  %v109_v25 = vadd.f32 %v320_v16, %v108_v23 }
  0xa9   :  { %v112_v26 = vmul.f32 %v109_v25, %v109_v25  ;;  %v119_v27 = vmul.f32 0.7978846, %v117_v24 }
  0xab   :  { %v114_v28 = vmul.f32 %v112_v26, %v109_v25  ;;  %322 = vtanh.f32 %v119_v27 }
  0xad   :  { %v116_v29 = vmul.f32 0.044715, %v114_v28 }
  0xaf   :  { %v118_v30 = vadd.f32 %v116_v29, %v109_v25 }
  0xb1   :  { %v120_v31 = vmul.f32 0.7978846, %v118_v30  ;;  %v323_v32 = vpop.eup %322 }
  0xb2   :  { %v123_v33 = vadd.f32 1.0, %v323_v32 }
  0xb3   :  { %324 = vtanh.f32 %v120_v31 }
  0xb4   :  { %v125_v36 = vmul.f32 0.5, %v123_v33 }
  0xb6   :  { %v127_v38 = vmul.f32 %v125_v36, %v107_v19 }
  0xb9   :  { %v325_v34 = vpop.eup %324 }
  0xba   :  { %v124_v35 = vadd.f32 1.0, %v325_v34 }
  0xbc   :  { %v126_v37 = vmul.f32 0.5, %v124_v35 }
  0xbe   :  { %v128_v39 = vmul.f32 %v126_v37, %v109_v25 }
  0xc0   :  { %v129_v40 = vpack.c.bf16 %v128_v39, %v127_v38 }
  0xc2   :  { %206 = vmatmul.bf16.vlgmr.msra.gmra.mxu1 %v129_v40 }
 0x13f   :  { %v207_v42 = vpop.f32.mrf.mxu1 }
 0x140   :  { %v208_v43 = vadd.f32 %v321_v41, %v207_v42 }
 0x142   :  { %212 = vst [vmem:[#allocation2] sm:$0xff] %v208_v43 }
 0x147   :  { %v209_v44 = vpop.f32.mrf.mxu1 }
 0x148   :  { %v210_v45 = vadd.f32 %v321_v41, %v209_v44 }
 0x14a   :  { %213 = vst [vmem:[#allocation2 + $0x8] sm:$0xff] %v210_v45 }
 0x14b   :  { %226 = dma.vmem_to_hbm [thread:$0]  %s219_s28, 256, %s221_s6, [#allocation3], %s353_s7, %s353_s7, %s354_s8  }
 0x14c   :  { %350 = dma.done.wait [#allocation3], 256  }
 0x14d   :  { %351 = vsyncadd [#allocation3], 4294967040 }
 0x14e   :  { %231 = vsyncpa [#allocation3], 1 }

</bundles_post_ra>
